<compile_context>
chip_gen: v5e
topology: v5e:2x2
jax: 0.10.0
libtpu: 0.0.40
codegen_flags: <defaults>
</compile_context>

<pallas_src>
import math
from functools import partial

import jax
import jax.numpy as jnp
from jax.experimental import pallas as pl
from jax.experimental.pallas import tpu as pltpu


def _round_up(x, m):
    return (x + m - 1) // m * m


def _pad2d(a, rows, cols):
    pr, pc = rows - a.shape[0], cols - a.shape[1]
    if pr or pc:
        a = jnp.pad(a, ((0, pr), (0, pc)))
    return a


# ---------------------------------------------------------------------------
# Kernels
# ---------------------------------------------------------------------------
def _noisy_linear_train_kernel(x_ref, wmu_ref, wsig_ref, weps_ref,
                               bmu_ref, bsig_ref, beps_ref, o_ref, acc_ref):
    k = pl.program_id(2)

    @pl.when(k == 0)
    def _():
        acc_ref[...] = jnp.zeros_like(acc_ref)

    # Compose the noisy weight tile on the VPU in its native [out, in] layout.
    w = wmu_ref[...] + wsig_ref[...] * weps_ref[...]            # [tn, tk]
    # Contract in_features of both operands on the MXU (no .T -> no XLU work).
    acc_ref[...] += jax.lax.dot_general(
        x_ref[...], w,
        dimension_numbers=(((1,), (1,)), ((), ())),
        preferred_element_type=jnp.float32)                     # [tm, tn]

    @pl.when(k == pl.num_programs(2) - 1)
    def _():
        b = bmu_ref[...] + bsig_ref[...] * beps_ref[...]        # [1, tn]
        o_ref[...] = (acc_ref[...] + b).astype(o_ref.dtype)


def _noisy_linear_eval_kernel(x_ref, wmu_ref, bmu_ref, o_ref, acc_ref):
    k = pl.program_id(2)

    @pl.when(k == 0)
    def _():
        acc_ref[...] = jnp.zeros_like(acc_ref)

    acc_ref[...] += jax.lax.dot_general(
        x_ref[...], wmu_ref[...],
        dimension_numbers=(((1,), (1,)), ((), ())),
        preferred_element_type=jnp.float32)

    @pl.when(k == pl.num_programs(2) - 1)
    def _():
        o_ref[...] = (acc_ref[...] + bmu_ref[...]).astype(o_ref.dtype)


# ---------------------------------------------------------------------------
# Wrapper
# ---------------------------------------------------------------------------
@partial(jax.jit, static_argnames=("training", "tm", "tn", "tk"))
def noisy_linear(x, weight_mu, weight_sigma, weight_epsilon,
                 bias_mu, bias_sigma, bias_epsilon, *,
                 training=True, tm=128, tn=256, tk=512):
    """Pallas TPU implementation of NoisyLinear.forward.

    x:        [..., in_features]          float32
    weight_*: [out_features, in_features]
    bias_*:   [out_features]
    returns:  [..., out_features]
    """
    out_f, in_f = weight_mu.shape
    lead_shape = x.shape[:-1]
    assert x.shape[-1] == in_f
    x2 = x.reshape(-1, in_f)
    B = x2.shape[0]

    # Clamp tile sizes to (8, 128)-aligned padded dims so tiny problems still
    # get a single well-formed tile; large problems use the default tiles
    # (tm=128, tn=256, tk=512 f32 -> ~4 MiB double-buffered in training mode,
    # fits every generation's scoped VMEM including v7x).
    tm = min(tm, _round_up(B, 8))
    tn = min(tn, _round_up(out_f, 128))
    tk = min(tk, _round_up(in_f, 128))

    Bp = _round_up(B, tm)
    Np = _round_up(out_f, tn)
    Kp = _round_up(in_f, tk)

    xp = _pad2d(x2, Bp, Kp)
    wmu = _pad2d(weight_mu, Np, Kp)
    bmu = _pad2d(bias_mu.reshape(1, out_f), 1, Np)

    grid = (Bp // tm, Np // tn, Kp // tk)   # reduction (k) axis last

    x_spec = pl.BlockSpec((tm, tk), lambda i, j, k: (i, k))
    w_spec = pl.BlockSpec((tn, tk), lambda i, j, k: (j, k))
    b_spec = pl.BlockSpec((1, tn), lambda i, j, k: (0, j))
    o_spec = pl.BlockSpec((tm, tn), lambda i, j, k: (i, j))

    cparams = pltpu.CompilerParams(
        dimension_semantics=("parallel", "parallel", "arbitrary"),
        vmem_limit_bytes=32 * 1024 * 1024)

    out_shape = jax.ShapeDtypeStruct((Bp, Np), x.dtype)
    scratch = [pltpu.VMEM((tm, tn), jnp.float32)]

    if training:
        wsig = _pad2d(weight_sigma, Np, Kp)
        weps = _pad2d(weight_epsilon, Np, Kp)
        bsig = _pad2d(bias_sigma.reshape(1, out_f), 1, Np)
        beps = _pad2d(bias_epsilon.reshape(1, out_f), 1, Np)
        yp = pl.pallas_call(
            _noisy_linear_train_kernel,
            out_shape=out_shape,
            grid_spec=pltpu.PrefetchScalarGridSpec(
                num_scalar_prefetch=0,
                grid=grid,
                in_specs=[x_spec, w_spec, w_spec, w_spec,
                          b_spec, b_spec, b_spec],
                out_specs=o_spec,
                scratch_shapes=scratch),
            compiler_params=cparams,
        )(xp, wmu, wsig, weps, bmu, bsig, beps)
    else:
        yp = pl.pallas_call(
            _noisy_linear_eval_kernel,
            out_shape=out_shape,
            grid_spec=pltpu.PrefetchScalarGridSpec(
                num_scalar_prefetch=0,
                grid=grid,
                in_specs=[x_spec, w_spec, b_spec],
                out_specs=o_spec,
                scratch_shapes=scratch),
            compiler_params=cparams,
        )(xp, wmu, bmu)

    y = yp[:B, :out_f]
    return y.reshape(*lead_shape, out_f)


# ---------------------------------------------------------------------------
# Parameter / noise init (matches reset_parameters() + reset_noise()):
# the PyTorch module uses independent Gaussian noise (normal_()), not
# factorized noise, so this matches the spec as written.
# ---------------------------------------------------------------------------
def init_noisy_linear_params(key, in_features, out_features, sigma_init=0.017):
    k_wmu, k_bmu, k_weps, k_beps = jax.random.split(key, 4)
    mu_range = 1.0 / math.sqrt(in_features)
    weight_mu = jax.random.uniform(
        k_wmu, (out_features, in_features), jnp.float32, -mu_range, mu_range)
    weight_sigma = jnp.full((out_features, in_features), sigma_init, jnp.float32)
    weight_epsilon = jax.random.normal(k_weps, (out_features, in_features), jnp.float32)
    bias_mu = jax.random.uniform(
        k_bmu, (out_features,), jnp.float32, -mu_range, mu_range)
    bias_sigma = jnp.full((out_features,), sigma_init, jnp.float32)
    bias_epsilon = jax.random.normal(k_beps, (out_features,), jnp.float32)
    return (weight_mu, weight_sigma, weight_epsilon,
            bias_mu, bias_sigma, bias_epsilon)


def _reference(x, params, training):
    (wmu, wsig, weps, bmu, bsig, beps) = params
    if training:
        w = wmu + wsig * weps
        b = bmu + bsig * beps
    else:
        w, b = wmu, bmu
    return x @ w.T + b


if __name__ == "__main__":
    key = jax.random.PRNGKey(0)
    k_params, k_x, k2_params, k2_x = jax.random.split(key, 4)

    # --- small shapes matching the module's typical DQN use ----------------
    batch, in_features, out_features = 2, 32, 64
    params = init_noisy_linear_params(k_params, in_features, out_features)
    x = jax.random.normal(k_x, (batch, in_features), jnp.float32)

    y_train = noisy_linear(x, *params, training=True)
    jax.block_until_ready(y_train)
    y_eval = noisy_linear(x, *params, training=False)
    jax.block_until_ready(y_eval)

    assert y_train.shape == (batch, out_features)
    assert jnp.allclose(y_train, _reference(x, params, True), atol=1e-4, rtol=1e-5)
    assert jnp.allclose(y_eval, _reference(x, params, False), atol=1e-4, rtol=1e-5)

    # --- ragged / multi-tile check (exercises grid j>1 and k>1 + padding) --
    b2, in2, out2 = 16, 640, 320
    params2 = init_noisy_linear_params(k2_params, in2, out2)
    x2 = jax.random.normal(k2_x, (b2, in2), jnp.float32)

    y2 = noisy_linear(x2, *params2, training=True)
    jax.block_until_ready(y2)
    assert y2.shape == (b2, out2)
    assert jnp.allclose(y2, _reference(x2, params2, True), atol=1e-3, rtol=1e-5)

    print("KERNEL_OK")
</pallas_src>

<mosaic_0001>
module attributes {stable_mosaic.version = 11 : i64} {
  func.func @_noisy_linear_train_kernel(%arg0: i32, %arg1: i32, %arg2: i32, %arg3: memref<8x128xf32, #tpu.memory_space<vmem>>, %arg4: memref<128x128xf32, #tpu.memory_space<vmem>>, %arg5: memref<128x128xf32, #tpu.memory_space<vmem>>, %arg6: memref<128x128xf32, #tpu.memory_space<vmem>>, %arg7: memref<1x128xf32, #tpu.memory_space<vmem>>, %arg8: memref<1x128xf32, #tpu.memory_space<vmem>>, %arg9: memref<1x128xf32, #tpu.memory_space<vmem>>, %arg10: memref<8x128xf32, #tpu.memory_space<vmem>>, %arg11: memref<8x128xf32, #tpu.memory_space<vmem>>) attributes {dimension_semantics = [#tpu.dimension_semantics<parallel>, #tpu.dimension_semantics<parallel>, #tpu.dimension_semantics<arbitrary>], iteration_bounds = array<i64: 1, 1, 1>, scalar_prefetch = 0 : i64, scratch_operands = 1 : i64, tpu.core_type = #tpu.core_type<tc>, window_params = [{transform_indices = @transform_0, window_bounds = array<i64: 8, 128>}, {transform_indices = @transform_1, window_bounds = array<i64: 128, 128>}, {transform_indices = @transform_2, window_bounds = array<i64: 128, 128>}, {transform_indices = @transform_3, window_bounds = array<i64: 128, 128>}, {transform_indices = @transform_4, window_bounds = array<i64: 1, 128>}, {transform_indices = @transform_5, window_bounds = array<i64: 1, 128>}, {transform_indices = @transform_6, window_bounds = array<i64: 1, 128>}, {transform_indices = @transform_7, window_bounds = array<i64: 8, 128>}]} {
    %c0_i32 = arith.constant 0 : i32
    %0 = arith.cmpi eq, %arg2, %c0_i32 : i32
    %1 = arith.extui %0 : i1 to i32
    %c0_i32_0 = arith.constant 0 : i32
    %2 = arith.cmpi ne, %1, %c0_i32_0 : i32
    scf.if %2 {
      %cst_14 = arith.constant 0.000000e+00 : f32
      %16 = vector.broadcast %cst_14 : f32 to vector<8x128xf32>
      %c0_15 = arith.constant 0 : index
      %c0_16 = arith.constant 0 : index
      %17 = vector.load %arg11[%c0_15, %c0_16] : memref<8x128xf32, #tpu.memory_space<vmem>>, vector<8x128xf32>
      tpu.vector_store %arg11[%c0_15, %c0_16], %16 {strides = array<i32>} : memref<8x128xf32, #tpu.memory_space<vmem>>, vector<8x128xf32>,
    } else {
    }
    %c0 = arith.constant 0 : index
    %c0_1 = arith.constant 0 : index
    %3 = vector.load %arg4[%c0, %c0_1] : memref<128x128xf32, #tpu.memory_space<vmem>>, vector<128x128xf32>
    %c0_2 = arith.constant 0 : index
    %c0_3 = arith.constant 0 : index
    %4 = vector.load %arg5[%c0_2, %c0_3] : memref<128x128xf32, #tpu.memory_space<vmem>>, vector<128x128xf32>
    %c0_4 = arith.constant 0 : index
    %c0_5 = arith.constant 0 : index
    %5 = vector.load %arg6[%c0_4, %c0_5] : memref<128x128xf32, #tpu.memory_space<vmem>>, vector<128x128xf32>
    %6 = arith.mulf %4, %5 : vector<128x128xf32>
    %7 = arith.addf %3, %6 : vector<128x128xf32>
    %c0_6 = arith.constant 0 : index
    %c0_7 = arith.constant 0 : index
    %8 = vector.load %arg11[%c0_6, %c0_7] : memref<8x128xf32, #tpu.memory_space<vmem>>, vector<8x128xf32>
    %c0_8 = arith.constant 0 : index
    %c0_9 = arith.constant 0 : index
    %9 = vector.load %arg3[%c0_8, %c0_9] : memref<8x128xf32, #tpu.memory_space<vmem>>, vector<8x128xf32>
    %cst = arith.constant dense<0.000000e+00> : vector<8x128xf32>
    %10 = tpu.matmul %9, %7, %cst {dimension_numbers = #tpu.dot_dimension_numbers<[1], [1], [0], [0], [0, 0, 1, 0], [], []>} : vector<8x128xf32>, vector<128x128xf32>, vector<8x128xf32> -> vector<8x128xf32>
    %11 = arith.addf %8, %10 : vector<8x128xf32>
    %c0_10 = arith.constant 0 : index
    %c0_11 = arith.constant 0 : index
    %12 = vector.load %arg11[%c0_10, %c0_11] : memref<8x128xf32, #tpu.memory_space<vmem>>, vector<8x128xf32>
    tpu.vector_store %arg11[%c0_10, %c0_11], %11 {strides = array<i32>} : memref<8x128xf32, #tpu.memory_space<vmem>>, vector<8x128xf32>,
    %c0_i32_12 = arith.constant 0 : i32
    %13 = arith.cmpi eq, %arg2, %c0_i32_12 : i32
    %14 = arith.extui %13 : i1 to i32
    %c0_i32_13 = arith.constant 0 : i32
    %15 = arith.cmpi ne, %14, %c0_i32_13 : i32
    scf.if %15 {
      %c0_14 = arith.constant 0 : index
      %c0_15 = arith.constant 0 : index
      %16 = vector.load %arg7[%c0_14, %c0_15] : memref<1x128xf32, #tpu.memory_space<vmem>>, vector<1x128xf32>
      %c0_16 = arith.constant 0 : index
      %c0_17 = arith.constant 0 : index
      %17 = vector.load %arg8[%c0_16, %c0_17] : memref<1x128xf32, #tpu.memory_space<vmem>>, vector<1x128xf32>
      %c0_18 = arith.constant 0 : index
      %c0_19 = arith.constant 0 : index
      %18 = vector.load %arg9[%c0_18, %c0_19] : memref<1x128xf32, #tpu.memory_space<vmem>>, vector<1x128xf32>
      %19 = arith.mulf %17, %18 : vector<1x128xf32>
      %20 = arith.addf %16, %19 : vector<1x128xf32>
      %c0_20 = arith.constant 0 : index
      %c0_21 = arith.constant 0 : index
      %21 = vector.load %arg11[%c0_20, %c0_21] : memref<8x128xf32, #tpu.memory_space<vmem>>, vector<8x128xf32>
      %22 = vector.broadcast %20 : vector<1x128xf32> to vector<8x128xf32>
      %23 = arith.addf %21, %22 : vector<8x128xf32>
      %c0_22 = arith.constant 0 : index
      %c0_23 = arith.constant 0 : index
      %24 = vector.load %arg10[%c0_22, %c0_23] : memref<8x128xf32, #tpu.memory_space<vmem>>, vector<8x128xf32>
      tpu.vector_store %arg10[%c0_22, %c0_23], %23 {strides = array<i32>} : memref<8x128xf32, #tpu.memory_space<vmem>>, vector<8x128xf32>,
    } else {
    }
    return
  }
  func.func @transform_0(%arg0: i32, %arg1: i32, %arg2: i32) -> (i32, i32) {
    %c0_i32 = arith.constant 0 : i32
    return %arg0, %arg2 : i32, i32
  }
  func.func @transform_1(%arg0: i32, %arg1: i32, %arg2: i32) -> (i32, i32) {
    %c0_i32 = arith.constant 0 : i32
    return %arg1, %arg2 : i32, i32
  }
  func.func @transform_2(%arg0: i32, %arg1: i32, %arg2: i32) -> (i32, i32) {
    %c0_i32 = arith.constant 0 : i32
    return %arg1, %arg2 : i32, i32
  }
  func.func @transform_3(%arg0: i32, %arg1: i32, %arg2: i32) -> (i32, i32) {
    %c0_i32 = arith.constant 0 : i32
    return %arg1, %arg2 : i32, i32
  }
  func.func @transform_4(%arg0: i32, %arg1: i32, %arg2: i32) -> (i32, i32) {
    %c0_i32 = arith.constant 0 : i32
    %c0_i32_0 = arith.constant 0 : i32
    return %c0_i32, %arg1 : i32, i32
  }
  func.func @transform_5(%arg0: i32, %arg1: i32, %arg2: i32) -> (i32, i32) {
    %c0_i32 = arith.constant 0 : i32
    %c0_i32_0 = arith.constant 0 : i32
    return %c0_i32, %arg1 : i32, i32
  }
  func.func @transform_6(%arg0: i32, %arg1: i32, %arg2: i32) -> (i32, i32) {
    %c0_i32 = arith.constant 0 : i32
    %c0_i32_0 = arith.constant 0 : i32
    return %c0_i32, %arg1 : i32, i32
  }
  func.func @transform_7(%arg0: i32, %arg1: i32, %arg2: i32) -> (i32, i32) {
    %c0_i32 = arith.constant 0 : i32
    return %arg0, %arg1 : i32, i32
  }
}

</mosaic_0001>

<bundles_post_ra>
// kernel: noisy_linear.1
= control target key start
LH: loop header
LB: loop body
LE: loop exit
PB: predicated region body
PF: predicated region fallthrough
CT: control target
= control target key end

     0   :  { %s352_s1 = inlined_call_operand.vmem [shape: f32[128,128], index: 1, kind: input, shape index: {}]   ;;  %s353_s2 = inlined_call_operand.vmem [shape: f32[128,128], index: 2, kind: input, shape index: {}]   ;;  %s354_s3 = inlined_call_operand.vmem [shape: f32[128,128], index: 3, kind: input, shape index: {}]   ;;  %s355_s0 = inlined_call_operand.vmem [shape: f32[8,128], index: 0, kind: input, shape index: {}]   ;;  %s356_s5 = inlined_call_operand.vmem [shape: f32[1,128], index: 5, kind: input, shape index: {}]   ;;  %s357_s6 = inlined_call_operand.vmem [shape: f32[1,128], index: 6, kind: input, shape index: {}]   ;;  %s358_s4 = inlined_call_operand.vmem [shape: f32[1,128], index: 4, kind: input, shape index: {}]   ;;  %s359_s7 = inlined_call_operand.vmem [shape: f32[8,128], index: 7, kind: output, shape index: {}]  }
   0x1   :  { %v46_v0 = vld [vmem:[%s352_s1 + $0x78] sm:$0xff]  ;;  %v61_v4 = vld [vmem:[%s353_s2 + $0x70] sm:$0xff]  ;;  %v60_v8 = vld [vmem:[%s353_s2 + $0x68] sm:$0xff] }
   0x2   :  { %v62_v1 = vld [vmem:[%s353_s2 + $0x78] sm:$0xff]  ;;  %v77_v5 = vld [vmem:[%s354_s3 + $0x70] sm:$0xff]  ;;  %v76_v9 = vld [vmem:[%s354_s3 + $0x68] sm:$0xff] }
   0x3   :  { %v78_v2 = vld [vmem:[%s354_s3 + $0x78] sm:$0xff]  ;;  %v45_v6 = vld [vmem:[%s352_s1 + $0x70] sm:$0xff]  ;;  %v93_v7 = vmul.f32 %v77_v5, %v61_v4  ;;  %v92_v12 = vmul.f32 %v76_v9, %v60_v8  ;;  %v44_v13 = vld [vmem:[%s352_s1 + $0x68] sm:$0xff] }
   0x4   :  { %v94_v3 = vmul.f32 %v78_v2, %v62_v1  ;;  %v59_v14 = vld [vmem:[%s353_s2 + $0x60] sm:$0xff]  ;;  %v58_v19 = vld [vmem:[%s353_s2 + $0x58] sm:$0xff]  ;;  %v57_v24 = vld [vmem:[%s353_s2 + $0x50] sm:$0xff] }
   0x5   :  { %v109_v11 = vadd.f32 %v93_v7, %v45_v6  ;;  %v75_v15 = vld [vmem:[%s354_s3 + $0x60] sm:$0xff]  ;;  %v108_v16 = vadd.f32 %v92_v12, %v44_v13  ;;  %v74_v20 = vld [vmem:[%s354_s3 + $0x58] sm:$0xff]  ;;  %v73_v25 = vld [vmem:[%s354_s3 + $0x50] sm:$0xff] }
   0x6   :  { %v110_v10 = vadd.f32 %v94_v3, %v46_v0  ;;  %v91_v17 = vmul.f32 %v75_v15, %v59_v14  ;;  %v43_v18 = vld [vmem:[%s352_s1 + $0x60] sm:$0xff]  ;;  %v90_v22 = vmul.f32 %v74_v20, %v58_v19  ;;  %v42_v23 = vld [vmem:[%s352_s1 + $0x58] sm:$0xff]  ;;  %v89_v27 = vmul.f32 %v73_v25, %v57_v24  ;;  %v41_v28 = vld [vmem:[%s352_s1 + $0x50] sm:$0xff] }
   0x7   :  { %v56_v29 = vld [vmem:[%s353_s2 + $0x48] sm:$0xff]  ;;  %v55_v34 = vld [vmem:[%s353_s2 + $0x40] sm:$0xff]  ;;  %v54_v39 = vld [vmem:[%s353_s2 + $0x38] sm:$0xff] }
   0x8   :  { %113 = vmatpush.xpose.msra.mxu0 %v110_v10  ;;  %v107_v21 = vadd.f32 %v91_v17, %v43_v18  ;;  %v106_v26 = vadd.f32 %v90_v22, %v42_v23  ;;  %v72_v30 = vld [vmem:[%s354_s3 + $0x48] sm:$0xff]  ;;  %v105_v31 = vadd.f32 %v89_v27, %v41_v28  ;;  %v71_v35 = vld [vmem:[%s354_s3 + $0x40] sm:$0xff]  ;;  %v70_v40 = vld [vmem:[%s354_s3 + $0x38] sm:$0xff] }
   0x9   :  { %v88_v32 = vmul.f32 %v72_v30, %v56_v29  ;;  %v40_v33 = vld [vmem:[%s352_s1 + $0x48] sm:$0xff]  ;;  %v87_v37 = vmul.f32 %v71_v35, %v55_v34  ;;  %v39_v38 = vld [vmem:[%s352_s1 + $0x40] sm:$0xff]  ;;  %v86_v42 = vmul.f32 %v70_v40, %v54_v39  ;;  %v38_v43 = vld [vmem:[%s352_s1 + $0x38] sm:$0xff] }
   0xa   :  { %v53_v44 = vld [vmem:[%s353_s2 + $0x30] sm:$0xff]  ;;  %v52_v49 = vld [vmem:[%s353_s2 + $0x28] sm:$0xff]  ;;  %v51_v54 = vld [vmem:[%s353_s2 + $0x20] sm:$0xff] }
   0xb   :  { %v104_v36 = vadd.f32 %v88_v32, %v40_v33  ;;  %v103_v41 = vadd.f32 %v87_v37, %v39_v38  ;;  %v69_v45 = vld [vmem:[%s354_s3 + $0x30] sm:$0xff]  ;;  %v102_v46 = vadd.f32 %v86_v42, %v38_v43  ;;  %v68_v50 = vld [vmem:[%s354_s3 + $0x28] sm:$0xff]  ;;  %v67_v55 = vld [vmem:[%s354_s3 + $0x20] sm:$0xff] }
   0xc   :  { %114 = vmatpush.xpose.msra.mxu0 %v109_v11  ;;  %v85_v47 = vmul.f32 %v69_v45, %v53_v44  ;;  %v37_v48 = vld [vmem:[%s352_s1 + $0x30] sm:$0xff]  ;;  %v84_v52 = vmul.f32 %v68_v50, %v52_v49  ;;  %v36_v53 = vld [vmem:[%s352_s1 + $0x28] sm:$0xff]  ;;  %v83_v57 = vmul.f32 %v67_v55, %v51_v54  ;;  %v35_v58 = vld [vmem:[%s352_s1 + $0x20] sm:$0xff] }
   0xd   :  { %v50_v59 = vld [vmem:[%s353_s2 + $0x18] sm:$0xff]  ;;  %v49_v0 = vld [vmem:[%s353_s2 + $0x10] sm:$0xff]  ;;  %v48_v5 = vld [vmem:[%s353_s2 + $0x8] sm:$0xff] }
   0xe   :  { %v101_v51 = vadd.f32 %v85_v47, %v37_v48  ;;  %v100_v56 = vadd.f32 %v84_v52, %v36_v53  ;;  %v66_v60 = vld [vmem:[%s354_s3 + $0x18] sm:$0xff]  ;;  %v99_v61 = vadd.f32 %v83_v57, %v35_v58  ;;  %v65_v1 = vld [vmem:[%s354_s3 + $0x10] sm:$0xff]  ;;  %v64_v6 = vld [vmem:[%s354_s3 + $0x8] sm:$0xff] }
   0xf   :  { %v82_v62 = vmul.f32 %v66_v60, %v50_v59  ;;  %v34_v63 = vld [vmem:[%s352_s1 + $0x18] sm:$0xff]  ;;  %v81_v3 = vmul.f32 %v65_v1, %v49_v0  ;;  %v33_v4 = vld [vmem:[%s352_s1 + $0x10] sm:$0xff]  ;;  %v80_v8 = vmul.f32 %v64_v6, %v48_v5  ;;  %v32_v9 = vld [vmem:[%s352_s1 + $0x8] sm:$0xff] }
  0x10   :  { %115 = vmatpush.xpose.msra.mxu0 %v108_v16  ;;  %v47_v10 = vld [vmem:[%s353_s2] sm:$0xff] }
  0x11   :  { %v98_v2 = vadd.f32 %v82_v62, %v34_v63  ;;  %v97_v7 = vadd.f32 %v81_v3, %v33_v4  ;;  %v63_v11 = vld [vmem:[%s354_s3] sm:$0xff]  ;;  %v96_v12 = vadd.f32 %v80_v8, %v32_v9 }
  0x12   :  { %v79_v13 = vmul.f32 %v63_v11, %v47_v10  ;;  %v31_v14 = vld [vmem:[%s352_s1] sm:$0xff] }
  0x13   :  { %v112_v16 = vld [vmem:[%s355_s0] sm:$0xff] }
  0x14   :  { %116 = vmatpush.xpose.msra.mxu0 %v107_v21  ;;  %v95_v15 = vadd.f32 %v79_v13, %v31_v14  ;;  %v139_v17 = vld [vmem:[%s356_s5] sm:$0x1] }
  0x15   :  { %v140_v18 = vld [vmem:[%s357_s6] sm:$0x1] }
  0x16   :  { %v141_v19 = vmul.f32 %v140_v18, %v139_v17  ;;  %v138_v20 = vld [vmem:[%s358_s4] sm:$0x1] }
  0x18   :  { %117 = vmatpush.xpose.msra.mxu0 %v106_v26  ;;  %v142_v21 = vadd.f32 %v141_v19, %v138_v20 }
  0x1a   :  { %v145_v22 = vperm.slane %v142_v21, 0 }
  0x1c   :  { %118 = vmatpush.xpose.msra.mxu0 %v105_v31 }
  0x20   :  { %119 = vmatpush.xpose.msra.mxu0 %v104_v36 }
  0x24   :  { %120 = vmatpush.xpose.msra.mxu0 %v103_v41 }
  0x28   :  { %121 = vmatpush.xpose.msra.mxu0 %v102_v46 }
  0x2c   :  { %122 = vmatpush.xpose.msra.mxu0 %v101_v51 }
  0x30   :  { %123 = vmatpush.xpose.msra.mxu0 %v100_v56 }
  0x34   :  { %124 = vmatpush.xpose.msra.mxu0 %v99_v61 }
  0x38   :  { %125 = vmatpush.xpose.msra.mxu0 %v98_v2 }
  0x3c   :  { %126 = vmatpush.xpose.msra.mxu0 %v97_v7 }
  0x40   :  { %127 = vmatpush.xpose.msra.mxu0 %v96_v12 }
  0x44   :  { %128 = vmatpush.xpose.msra.mxu0 %v95_v15 }
  0x47   :  { %129 = vmatmul.f32.vlgmr.msra.gmra.mxu0 %v112_v16 }
  0xc4   :  { %v130_v23 = vpop.f32.mrf.mxu0 }
  0xc5   :  { %v147_v24 = vadd.f32 %v145_v22, %v130_v23 }
  0xc7   :  { %148 = vst [vmem:[%s359_s7] sm:$0xff] %v147_v24 }

</bundles_post_ra>
